<compile_context>
chip_gen: v6e
topology: v6e:2x2x1
jax: 0.10.0
libtpu: 0.0.40
codegen_flags: <defaults>
</compile_context>

<pallas_src>
import jax
import jax.numpy as jnp
from jax import lax
from jax.experimental import pallas as pl
from jax.experimental.pallas import tpu as pltpu

# Row offsets of the small parameters inside the packed (56, 128) f32 slab (8-aligned rows).
_W2_ROW0 = 0    # rows 0..23, cols 0..35 : w2  (24, 36)
_B1_ROW = 24    # row 24,     cols 0..23 : b1  (24,)
_B2_ROW = 32    # row 32,     cols 0..35 : b2  (36,)
_W3_ROW = 40    # row 40,     cols 0..35 : w3  (36,)  (fc3 weight as a row)
_B3_ROW = 48    # row 48,     col 0      : b3  scalar
_SLAB_SHAPE = (56, 128)


def policy_net_kernel(x_ref, w1t_ref, slab_ref, o_ref):
    # fc1: x (B, 10000) f32 -> bf16, w1t (24, 10000) bf16; contract over the 10000 axis
    # of BOTH operands (i.e. x @ w1t.T) so the long axis stays lane-major for each.
    x = x_ref[...].astype(jnp.bfloat16)
    h1 = lax.dot_general(
        x, w1t_ref[...],
        dimension_numbers=(((1,), (1,)), ((), ())),
        preferred_element_type=jnp.float32,
    )                                                   # (B, 24) f32
    b1 = slab_ref[_B1_ROW:_B1_ROW + 1, 0:24]            # (1, 24)
    h1 = jnp.maximum(h1 + b1, 0.0)

    # fc2 + ReLU
    w2 = slab_ref[_W2_ROW0:_W2_ROW0 + 24, 0:36]         # (24, 36)
    b2 = slab_ref[_B2_ROW:_B2_ROW + 1, 0:36]            # (1, 36)
    h2 = jnp.dot(h1, w2, preferred_element_type=jnp.float32)
    h2 = jnp.maximum(h2 + b2, 0.0)                      # (B, 36)

    # fc3 + sigmoid: (B,36)·(36,) done as broadcast-multiply + lane reduction
    # (avoids a (36,1) lane-padded matmul operand).
    w3_row = slab_ref[_W3_ROW:_W3_ROW + 1, 0:36]        # (1, 36)
    b3 = slab_ref[_B3_ROW:_B3_ROW + 1, 0:1]             # (1, 1)
    z = jnp.sum(h2 * w3_row, axis=-1, keepdims=True) + b3
    o_ref[...] = jax.nn.sigmoid(z)


def policy_net_forward(x, w1t, slab):
    """x: (B, 10000) float32, w1t: (24, 10000) bfloat16, slab: (56, 128) float32 -> (B, 1) f32."""
    B = x.shape[0]
    vmem = pl.BlockSpec(memory_space=pltpu.MemorySpace.VMEM)
    return pl.pallas_call(
        policy_net_kernel,
        out_shape=jax.ShapeDtypeStruct((B, 1), jnp.float32),
        in_specs=[vmem, vmem, vmem],
        out_specs=vmem,
    )(x, w1t, slab)


def init_params(key):
    """nn.Linear-style U(-1/sqrt(fan_in), 1/sqrt(fan_in)) init.

    Returns (w1t_bf16, slab_f32, raw) where raw = (w1t, b1, w2, b2, w3, b3) for the reference.
    Weights are generated directly in nn.Linear's (out_features, in_features) layout, so w1t is
    (24, 10000); w2/w3 are transposed to (in, out) for the y = x @ W form used in the kernel.
    """
    keys = jax.random.split(key, 6)
    dims = [(10000, 24), (24, 36), (36, 1)]
    raw = []
    for i, (fan_in, fan_out) in enumerate(dims):
        bound = 1.0 / jnp.sqrt(jnp.float32(fan_in))
        w = jax.random.uniform(keys[2 * i], (fan_out, fan_in), jnp.float32,
                               minval=-bound, maxval=bound)      # (out, in), like nn.Linear
        b = jax.random.uniform(keys[2 * i + 1], (fan_out,), jnp.float32,
                               minval=-bound, maxval=bound)
        raw.extend([w, b])
    w1t, b1, w2_oi, b2, w3_oi, b3 = raw

    w1t_bf16 = w1t.astype(jnp.bfloat16)          # (24, 10000) bf16, long axis on lanes
    w2 = w2_oi.T                                 # (24, 36)
    w3 = w3_oi.T                                 # (36, 1)

    # Pack the small params into a single pre-padded VMEM slab (one DMA instead of five).
    slab = jnp.zeros(_SLAB_SHAPE, jnp.float32)
    slab = slab.at[_W2_ROW0:_W2_ROW0 + 24, 0:36].set(w2)
    slab = slab.at[_B1_ROW, 0:24].set(b1)
    slab = slab.at[_B2_ROW, 0:36].set(b2)
    slab = slab.at[_W3_ROW, 0:36].set(w3[:, 0])
    slab = slab.at[_B3_ROW, 0].set(b3[0])

    return w1t_bf16, slab, (w1t_bf16, b1, w2, b2, w3, b3)


if __name__ == "__main__":
    key = jax.random.PRNGKey(0)
    k_params, k_x = jax.random.split(key)
    w1t, slab, raw = init_params(k_params)

    # PyTorch forward takes a numpy array and casts to float; here batch=2, features=10000.
    x = jax.random.normal(k_x, (2, 10000), dtype=jnp.float32)

    out = policy_net_forward(x, w1t, slab)
    out = jax.block_until_ready(out)

    # sanity: shape (2, 1), values in (0, 1) due to sigmoid
    assert out.shape == (2, 1)
    assert bool(jnp.all((out > 0.0) & (out < 1.0)))

    # reference check in plain JAX using the same bf16 fc1 weights / dtypes
    w1t_r, b1, w2, b2, w3, b3 = raw
    h1 = lax.dot_general(x.astype(jnp.bfloat16), w1t_r,
                         dimension_numbers=(((1,), (1,)), ((), ())),
                         preferred_element_type=jnp.float32)
    h1 = jnp.maximum(h1 + b1[None, :], 0.0)
    h2 = jnp.maximum(h1 @ w2 + b2[None, :], 0.0)
    ref = jax.nn.sigmoid(h2 @ w3 + b3[None, :])
    assert bool(jnp.allclose(out, ref, atol=2e-3, rtol=1e-3))

    print("KERNEL_OK")
</pallas_src>

<mosaic_0001>
module attributes {stable_mosaic.version = 11 : i64} {
  func.func @policy_net_kernel(%arg0: memref<2x10000xf32, #tpu.memory_space<vmem>>, %arg1: memref<24x10000xbf16, #tpu.memory_space<vmem>>, %arg2: memref<56x128xf32, #tpu.memory_space<vmem>>, %arg3: memref<2x1xf32, #tpu.memory_space<vmem>>) attributes {dimension_semantics = [], scalar_prefetch = 0 : i64, scratch_operands = 0 : i64, tpu.core_type = #tpu.core_type<tc>} {
    %c0 = arith.constant 0 : index
    %c0_0 = arith.constant 0 : index
    %0 = vector.load %arg0[%c0, %c0_0] : memref<2x10000xf32, #tpu.memory_space<vmem>>, vector<2x10000xf32>
    %1 = arith.truncf %0 : vector<2x10000xf32> to vector<2x10000xbf16>
    %c0_1 = arith.constant 0 : index
    %c0_2 = arith.constant 0 : index
    %2 = vector.load %arg1[%c0_1, %c0_2] : memref<24x10000xbf16, #tpu.memory_space<vmem>>, vector<24x10000xbf16>
    %cst = arith.constant dense<0.000000e+00> : vector<2x24xf32>
    %3 = tpu.matmul %1, %2, %cst {dimension_numbers = #tpu.dot_dimension_numbers<[1], [1], [0], [0], [0, 0, 1, 0], [], []>} : vector<2x10000xbf16>, vector<24x10000xbf16>, vector<2x24xf32> -> vector<2x24xf32>
    %c24 = arith.constant 24 : index
    %c0_3 = arith.constant 0 : index
    %4 = vector.load %arg2[%c24, %c0_3] : memref<56x128xf32, #tpu.memory_space<vmem>>, vector<1x24xf32>
    %5 = vector.broadcast %4 : vector<1x24xf32> to vector<2x24xf32>
    %6 = arith.addf %3, %5 : vector<2x24xf32>
    %cst_4 = arith.constant 0.000000e+00 : f32
    %7 = vector.broadcast %cst_4 : f32 to vector<2x24xf32>
    %8 = arith.maximumf %6, %7 : vector<2x24xf32>
    %c0_5 = arith.constant 0 : index
    %c0_6 = arith.constant 0 : index
    %9 = vector.load %arg2[%c0_5, %c0_6] : memref<56x128xf32, #tpu.memory_space<vmem>>, vector<24x36xf32>
    %c32 = arith.constant 32 : index
    %c0_7 = arith.constant 0 : index
    %10 = vector.load %arg2[%c32, %c0_7] : memref<56x128xf32, #tpu.memory_space<vmem>>, vector<1x36xf32>
    %cst_8 = arith.constant dense<0.000000e+00> : vector<2x36xf32>
    %11 = tpu.matmul %8, %9, %cst_8 {dimension_numbers = #tpu.dot_dimension_numbers<[1], [0], [0], [1], [0, 0, 1, 1], [], []>} : vector<2x24xf32>, vector<24x36xf32>, vector<2x36xf32> -> vector<2x36xf32>
    %12 = vector.broadcast %10 : vector<1x36xf32> to vector<2x36xf32>
    %13 = arith.addf %11, %12 : vector<2x36xf32>
    %cst_9 = arith.constant 0.000000e+00 : f32
    %14 = vector.broadcast %cst_9 : f32 to vector<2x36xf32>
    %15 = arith.maximumf %13, %14 : vector<2x36xf32>
    %c40 = arith.constant 40 : index
    %c0_10 = arith.constant 0 : index
    %16 = vector.load %arg2[%c40, %c0_10] : memref<56x128xf32, #tpu.memory_space<vmem>>, vector<1x36xf32>
    %c48 = arith.constant 48 : index
    %c0_11 = arith.constant 0 : index
    %17 = vector.load %arg2[%c48, %c0_11] : memref<56x128xf32, #tpu.memory_space<vmem>>, vector<1x1xf32>
    %18 = vector.broadcast %16 : vector<1x36xf32> to vector<2x36xf32>
    %19 = arith.mulf %15, %18 : vector<2x36xf32>
    %cst_12 = arith.constant dense<0.000000e+00> : vector<2xf32>
    %20 = vector.multi_reduction <add>, %19, %cst_12 [1] : vector<2x36xf32> to vector<2xf32>
    %21 = vector.shape_cast %20 : vector<2xf32> to vector<2x1xf32>
    %22 = vector.broadcast %17 : vector<1x1xf32> to vector<2x1xf32>
    %23 = arith.addf %21, %22 : vector<2x1xf32>
    %24 = arith.negf %23 : vector<2x1xf32>
    %25 = math.exp %24 : vector<2x1xf32>
    %cst_13 = arith.constant 1.000000e+00 : f32
    %26 = vector.broadcast %cst_13 : f32 to vector<2x1xf32>
    %27 = arith.addf %26, %25 : vector<2x1xf32>
    %28 = arith.divf %26, %27 : vector<2x1xf32>
    %c0_14 = arith.constant 0 : index
    %c0_15 = arith.constant 0 : index
    %29 = vector.load %arg3[%c0_14, %c0_15] : memref<2x1xf32, #tpu.memory_space<vmem>>, vector<2x1xf32>
    tpu.vector_store %arg3[%c0_14, %c0_15], %28 {strides = array<i32>} : memref<2x1xf32, #tpu.memory_space<vmem>>, vector<2x1xf32>,
    return
  }
}

</mosaic_0001>

<bundles_post_ra>
// kernel: tpu_custom_call.1
= control target key start
LH: loop header
LB: loop body
LE: loop exit
PB: predicated region body
PF: predicated region fallthrough
CT: control target
= control target key end

     0   :  { %8 = vsyncpa [#allocation3], 0  ;;  %s3691_s0 = inlined_call_operand.hbm [shape: f32[2,10000], index: 0, kind: input, shape index: {}]   ;;  %s3692_s1 = inlined_call_operand.hbm [shape: bf16[24,10000], index: 1, kind: input, shape index: {}]   ;;  %s3693_s2 = inlined_call_operand.hbm [shape: f32[56,128], index: 2, kind: input, shape index: {}]   ;;  %s3694_s3 = inlined_call_operand.vmem [shape: f32[2,1], index: 3, kind: output, shape index: {}]  }
   0x1   :  { %9 = vsyncpa [#allocation5], 0  ;;  %s3595_s12 = smov [#allocation4]  }
   0x2   :  { %s25_s13 = sshll.u32 %s3595_s12, 4  ;;  %s26_s13 = int_to_ptr.vmem [resolvable:$true] %s25_s13 }
   0x3   :  { %s3539_s14 = scalar_lea.vmem %s26_s13, 15168  ;;  %p3544_p1 = scmp.lt.s32.totalorder %s26_s13, %s26_s13 }
   0x4   :  { %p3540_p0 = scmp.ne.s32.totalorder %s26_s13, %s3539_s14  ;;  %p3545_p2 = scmp.lt.s32.totalorder %s3539_s14, %s3539_s14 }
   0x6   :  { %p3546_p3 = por %p3545_p2, %p3544_p1 }
   0x8   :  { %p3547_p4 = pnand %p3546_p3, %p3540_p0 }
   0xa   :  { %3550 = shalt.err (!%p3547_p4)
}
   0xb   :  { %s3596_s15 = smov 5056   ;;  %s3597_s16 = smov 316  }
   0xc   :  { %31 = dma.hbm_to_vmem [thread:$0]  %s3692_s1, 15168, %s26_s13, [#allocation5], %s3596_s15, %s3596_s15, %s3597_s16  }
   0xd   :  { %s3598_s19 = smov [#allocation2]   ;;  %s3599_s21 = smov [#allocation6]  }
   0xe   :  { %s16_s20 = sshll.u32 %s3598_s19, 4  ;;  %s37_s22 = sshll.u32 %s3599_s21, 4  ;;  %s17_s20 = int_to_ptr.vmem [resolvable:$true] %s16_s20  ;;  %s38_s22 = int_to_ptr.vmem [resolvable:$true] %s37_s22 }
   0xf   :  { %s3559_s23 = scalar_lea.vmem %s17_s20, 2528  ;;  %p3564_p6 = scmp.lt.s32.totalorder %s17_s20, %s17_s20 }
  0x10   :  { %p3560_p5 = scmp.ne.s32.totalorder %s17_s20, %s3559_s23  ;;  %p3565_p7 = scmp.lt.s32.totalorder %s3559_s23, %s3559_s23 }
  0x12   :  { %p3566_p8 = por %p3565_p7, %p3564_p6 }
  0x14   :  { %p3567_p9 = pnand %p3566_p8, %p3560_p5 }
  0x16   :  { %3570 = shalt.err (!%p3567_p9)
}
  0x17   :  { %19 = dma.hbm_to_vmem [thread:$0]  %s3691_s0, 2528, %s17_s20, [#allocation3]  }
  0x18   :  { %s3579_s26 = scalar_lea.vmem %s38_s22, 896  ;;  %p3584_p11 = scmp.lt.s32.totalorder %s38_s22, %s38_s22 }
  0x19   :  { %p3580_p10 = scmp.ne.s32.totalorder %s38_s22, %s3579_s26  ;;  %p3585_p12 = scmp.lt.s32.totalorder %s3579_s26, %s3579_s26 }
  0x1b   :  { %p3586_p13 = por %p3585_p12, %p3584_p11 }
  0x1d   :  { %p3587_p0 = pnand %p3586_p13, %p3580_p10 }
  0x1f   :  { %3590 = shalt.err (!%p3587_p0)
}
  0x20   :  { %s3600_s1 = smov 128   ;;  %s3601_s27 = smov 8  }
  0x21   :  { %43 = dma.hbm_to_vmem [thread:$0]  %s3693_s2, 896, %s38_s22, [#allocation5], %s3600_s1, %s3600_s1, %s3601_s27  }
  0x22   :  { %3591 = dma.done.wait [#allocation3], 2528  }
  0x23   :  { %3592 = vsyncadd [#allocation3], 4294964768 }
  0x24   :  { %3593 = dma.done.wait [#allocation5], 16064  }
  0x25   :  { %3594 = vsyncadd [#allocation5], 4294951232  ;;  %v98_v0 = vlaneseq  ;;  %v3602_v1 = vmov 1983009808   ;;  %v671_v5 = vld [vmem:[#allocation4 + $0x278] sm:$0xff]  ;;  %v672_v6 = vld [vmem:[#allocation4 + $0x280] sm:$0xff] }
  0x26   :  { %v96_v2 = vunpack.c.l.s4 %v3602_v1  ;;  %v3192_v8 = vcombine.high %v671_v5, %v671_v5  ;;  %v3194_v9 = vcombine.high %v672_v6, %v672_v6  ;;  %v3191_v10 = vcombine.low %v671_v5, %v671_v5  ;;  %v3314_v12 = vld [vmem:[#allocation4 + $0x4] ss:$316 sps:$4 sm:$0xff]   ;;  %v3316_v13 = vld [vmem:[#allocation4 + $0xc] ss:$316 sps:$4 sm:$0xff]   ;;  %v674_v21 = vld [vmem:[#allocation4 + $0x290] sm:$0xff] }
  0x27   :  { %v99_v4 = vshrl.u32 %v98_v0, 7  ;;  %v3193_v11 = vcombine.low %v672_v6, %v672_v6  ;;  %v54_v14 = vld [vmem:[#allocation2] sm:$0xff]  ;;  %v55_v22 = vld [vmem:[#allocation2 + $0x8] sm:$0xff]  ;;  %v3198_v29 = vcombine.high %v674_v21, %v674_v21  ;;  %v3197_v37 = vcombine.low %v674_v21, %v674_v21  ;;  %v3330_v39 = vld [vmem:[#allocation4 + $0x1c] ss:$316 sps:$4 sm:$0xff]  }
  0x28   :  { %v97_v3 = vunpack.c.0.s8 %v96_v2  ;;  %1409 = vmatprep.subr.bf16.mxu0 %v3192_v8  ;;  %1449 = vmatprep.subr.bf16.mxu1 %v3194_v9  ;;  %v94_v16 = vcombine.high %v54_v14, %v54_v14  ;;  %v673_v19 = vld [vmem:[#allocation4 + $0x288] sm:$0xff]  ;;  %v3318_v20 = vld [vmem:[#allocation4] ss:$316 sps:$4 sm:$0xff]   ;;  %v111_v27 = vcombine.high %v55_v22, %v55_v22  ;;  %v3327_v38 = vld [vmem:[#allocation4 + $0x14] ss:$316 sps:$4 sm:$0xff]   ;;  %vm1387_vm0 = vcmask 130048  }
  0x29   :  { %1410 = vmatpush1.bf16.xpose.msra.mxu0 %v3191_v10  ;;  %1450 = vmatpush1.bf16.xpose.msra.mxu1 %v3193_v11  ;;  %v3319_v23 = vld [vmem:[#allocation4 + $0x8] ss:$316 sps:$4 sm:$0xff]   ;;  %v3196_v26 = vcombine.high %v673_v19, %v673_v19  ;;  %v3195_v36 = vcombine.low %v673_v19, %v673_v19  ;;  %v56_v42 = vld [vmem:[#allocation2 + $0x10] sm:$0xff]  ;;  %v57_v62 = vld [vmem:[#allocation2 + $0x18] sm:$0xff]  ;;  %vm3604_vm1 = vmmov 0   ;;  %vm3006_vm2 = vcmask 195584  }
  0x2a   :  { %v3634_v7 = vsub.s32 %v97_v3, %v99_v4  ;;  %1411 = vmatprep.subr.bf16.mxu0 %v3314_v12  ;;  %1451 = vmatprep.subr.bf16.mxu1 %v3316_v13  ;;  %v675_v43 = vld [vmem:[#allocation4 + $0x298] sm:$0xff]  ;;  %v676_v44 = vld [vmem:[#allocation4 + $0x2a0] sm:$0xff]  ;;  %v128_v45 = vcombine.high %v56_v42, %v56_v42  ;;  %v3325_v46 = vld [vmem:[#allocation4 + $0x10] ss:$316 sps:$4 sm:$0xff]   ;;  %v145_v1 = vcombine.high %v57_v62, %v57_v62  ;;  %vm3088_vm3 = vcmask 287744  }
  0x2b   :  { %v3328_v47 = vld [vmem:[#allocation4 + $0x18] ss:$316 sps:$4 sm:$0xff]   ;;  %v3200_v48 = vcombine.high %v675_v43, %v675_v43  ;;  %v3202_v49 = vcombine.high %v676_v44, %v676_v44  ;;  %v3199_v56 = vcombine.low %v675_v43, %v675_v43  ;;  %v3201_v57 = vcombine.low %v676_v44, %v676_v44  ;;  %v3338_v58 = vld [vmem:[#allocation4 + $0x24] ss:$316 sps:$4 sm:$0xff]   ;;  %v3341_v59 = vld [vmem:[#allocation4 + $0x2c] ss:$316 sps:$4 sm:$0xff]  }
  0x2c   :  { %v101_v15 = vrot.slane %v54_v14, %v3634_v7  ;;  %v108_v18 = vrot.slane %v94_v16, %v3634_v7  ;;  %v118_v30 = vrot.slane %v55_v22, %v3634_v7  ;;  %v125_v31 = vrot.slane %v111_v27, %v3634_v7  ;;  %v677_v63 = vld [vmem:[#allocation4 + $0x2a8] sm:$0xff]  ;;  %v678_v0 = vld [vmem:[#allocation4 + $0x2b0] sm:$0xff]  ;;  %v3336_v2 = vld [vmem:[#allocation4 + $0x20] ss:$316 sps:$4 sm:$0xff]  }
  0x2d   :  { %v135_v50 = vrot.slane %v56_v42, %v3634_v7  ;;  %v142_v51 = vrot.slane %v128_v45, %v3634_v7  ;;  %v3339_v3 = vld [vmem:[#allocation4 + $0x28] ss:$316 sps:$4 sm:$0xff]   ;;  %v3204_v4 = vcombine.high %v677_v63, %v677_v63  ;;  %v3206_v5 = vcombine.high %v678_v0, %v678_v0  ;;  %v3352_v16 = vld [vmem:[#allocation4 + $0x3c] ss:$316 sps:$4 sm:$0xff]  }
  0x2e   :  { %v109_v17 = vcombine.high %v101_v15, %v101_v15  ;;  %v110_v25 = vcombine.high %v108_v18, %v108_v18  ;;  %v126_v32 = vcombine.high %v118_v30, %v118_v30  ;;  %v127_v33 = vcombine.high %v125_v31, %v125_v31  ;;  %v680_v21 = vld [vmem:[#allocation4 + $0x2c0] sm:$0xff] }
  0x2f   :  { %v512_v34 = vpack.c.bf16 %v101_v15, %v101_v15  ;;  %v514_v35 = vpack.c.bf16 %v108_v18, %v108_v18  ;;  %v143_v52 = vcombine.high %v135_v50, %v135_v50  ;;  %v144_v53 = vcombine.high %v142_v51, %v142_v51  ;;  %v3349_v15 = vld [vmem:[#allocation4 + $0x34] ss:$316 sps:$4 sm:$0xff]   ;;  %v3358_v43 = vld [vmem:[#allocation4 + $0x40] ss:$316 sps:$4 sm:$0xff]   ;;  %v3361_v44 = vld [vmem:[#allocation4 + $0x48] ss:$316 sps:$4 sm:$0xff]  }
  0x30   :  { %v513_v24 = vpack.c.bf16 %v109_v17, %v109_v17  ;;  %v515_v28 = vpack.c.bf16 %v110_v25, %v110_v25  ;;  %v517_v40 = vpack.c.bf16 %v126_v32, %v126_v32  ;;  %v519_v41 = vpack.c.bf16 %v127_v33, %v127_v33  ;;  %v58_v17 = vld [vmem:[#allocation2 + $0x20] sm:$0xff] }
  0x31   :  { %1412 = vmatpush1.bf16.xpose.msra.mxu0 %v3318_v20  ;;  %1452 = vmatpush1.bf16.xpose.msra.mxu1 %v3319_v23  ;;  %v516_v54 = vpack.c.bf16 %v118_v30, %v118_v30  ;;  %v518_v55 = vpack.c.bf16 %v125_v31, %v125_v31  ;;  %v521_v60 = vpack.c.bf16 %v143_v52, %v143_v52  ;;  %v679_v20 = vld [vmem:[#allocation4 + $0x2b8] sm:$0xff]  ;;  %v3347_v23 = vld [vmem:[#allocation4 + $0x30] ss:$316 sps:$4 sm:$0xff]   ;;  %vm3103_vm4 = vcmask 1024  }
  0x32   :  { %1429 = vmatprep.mubr.bf16.mxu0 %v513_v24  ;;  %1469 = vmatprep.mubr.bf16.mxu1 %v515_v28  ;;  %v523_v61 = vpack.c.bf16 %v144_v53, %v144_v53  ;;  %v152_v6 = vrot.slane %v57_v62, %v3634_v7  ;;  %v159_v8 = vrot.slane %v145_v1, %v3634_v7  ;;  %v3350_v24 = vld [vmem:[#allocation4 + $0x38] ss:$316 sps:$4 sm:$0xff]  }
  0x33   :  { %1489 = vmatprep.subr.bf16.mxu0 %v3196_v26  ;;  %1529 = vmatprep.subr.bf16.mxu1 %v3198_v29  ;;  %v520_v11 = vpack.c.bf16 %v135_v50, %v135_v50  ;;  %v522_v12 = vpack.c.bf16 %v142_v51, %v142_v51  ;;  %v3203_v13 = vcombine.low %v677_v63, %v677_v63  ;;  %v3369_v63 = vld [vmem:[#allocation4 + $0x50] ss:$316 sps:$4 sm:$0xff]  }
  0x34   :  { %v160_v9 = vcombine.high %v152_v6, %v152_v6  ;;  %v161_v10 = vcombine.high %v159_v8, %v159_v8  ;;  %v3205_v14 = vcombine.low %v678_v0, %v678_v0  ;;  %v162_v22 = vcombine.high %v58_v17, %v58_v17  ;;  %v3372_v0 = vld [vmem:[#allocation4 + $0x58] ss:$316 sps:$4 sm:$0xff]  }
  0x35   :  { %v3208_v25 = vcombine.high %v679_v20, %v679_v20  ;;  %v3210_v26 = vcombine.high %v680_v21, %v680_v21  ;;  %v169_v27 = vrot.slane %v58_v17, %v3634_v7  ;;  %v524_v31 = vpack.c.bf16 %v152_v6, %v152_v6  ;;  %v685_v17 = vld [vmem:[#allocation4 + $0x2e8] sm:$0xff] }
  0x36   :  { %v525_v18 = vpack.c.bf16 %v160_v9, %v160_v9  ;;  %v527_v19 = vpack.c.bf16 %v161_v10, %v161_v10  ;;  %v176_v28 = vrot.slane %v162_v22, %v3634_v7  ;;  %v526_v32 = vpack.c.bf16 %v159_v8, %v159_v8 }
  0x37   :  { %v177_v29 = vcombine.high %v169_v27, %v169_v27  ;;  %v3207_v33 = vcombine.low %v679_v20, %v679_v20  ;;  %v528_v51 = vpack.c.bf16 %v169_v27, %v169_v27  ;;  %v3380_v20 = vld [vmem:[#allocation4 + $0x60] ss:$316 sps:$4 sm:$0xff]   ;;  %v3220_v22 = vcombine.high %v685_v17, %v685_v17 }
  0x38   :  { %1430 = vmatmul.mubr.bf16.vlgmr.msra.gmra.mxu0 %v512_v34  ;;  %1470 = vmatmul.mubr.bf16.vlgmr.msra.gmra.mxu1 %v514_v35  ;;  %v178_v30 = vcombine.high %v176_v28, %v176_v28  ;;  %v3209_v34 = vcombine.low %v680_v21, %v680_v21  ;;  %v3360_v35 = vld [vmem:[#allocation4 + $0x44] ss:$316 sps:$4 sm:$0xff]   ;;  %v530_v52 = vpack.c.bf16 %v176_v28, %v176_v28 }
  0x39   :  { %1490 = vmatpush1.bf16.xpose.msra.mxu0 %v3195_v36  ;;  %1530 = vmatpush1.bf16.xpose.msra.mxu1 %v3197_v37  ;;  %v3363_v36 = vld [vmem:[#allocation4 + $0x4c] ss:$316 sps:$4 sm:$0xff]   ;;  %v529_v37 = vpack.c.bf16 %v177_v29, %v177_v29 }
  0x3a   :  { %1491 = vmatprep.subr.bf16.mxu0 %v3327_v38  ;;  %1531 = vmatprep.subr.bf16.mxu1 %v3330_v39  ;;  %v531_v38 = vpack.c.bf16 %v178_v30, %v178_v30  ;;  %v59_v39 = vld [vmem:[#allocation2 + $0x28] sm:$0xff]  ;;  %v3219_v30 = vcombine.low %v685_v17, %v685_v17 }
  0x3b   :  { %1509 = vmatprep.mubr.bf16.mxu0 %v517_v40  ;;  %1549 = vmatprep.mubr.bf16.mxu1 %v519_v41  ;;  %v681_v40 = vld [vmem:[#allocation4 + $0x2c8] sm:$0xff]  ;;  %v682_v41 = vld [vmem:[#allocation4 + $0x2d0] sm:$0xff]  ;;  %v179_v42 = vcombine.high %v59_v39, %v59_v39 }
  0x3c   :  { %v3212_v45 = vcombine.high %v681_v40, %v681_v40  ;;  %v3211_v53 = vcombine.low %v681_v40, %v681_v40  ;;  %v3383_v21 = vld [vmem:[#allocation4 + $0x68] ss:$316 sps:$4 sm:$0xff]   ;;  %v3391_v40 = vld [vmem:[#allocation4 + $0x70] ss:$316 sps:$4 sm:$0xff]  }
  0x3d   :  { %v3413_v17 = vld [vmem:[#allocation4 + $0x90] ss:$316 sps:$4 sm:$0xff]  }
  0x41   :  { %1492 = vmatpush1.bf16.xpose.msra.mxu0 %v3325_v46  ;;  %1532 = vmatpush1.bf16.xpose.msra.mxu1 %v3328_v47  ;;  %v3214_v46 = vcombine.high %v682_v41, %v682_v41  ;;  %v186_v47 = vrot.slane %v59_v39, %v3634_v7 }
  0x42   :  { %1569 = vmatprep.subr.bf16.mxu0 %v3200_v48  ;;  %1609 = vmatprep.subr.bf16.mxu1 %v3202_v49  ;;  %v193_v48 = vrot.slane %v179_v42, %v3634_v7 }
  0x43   :  { %v194_v49 = vcombine.high %v186_v47, %v186_v47  ;;  %v532_v8 = vpack.c.bf16 %v186_v47, %v186_v47 }
  0x44   :  { %v195_v50 = vcombine.high %v193_v48, %v193_v48  ;;  %v534_v9 = vpack.c.bf16 %v193_v48, %v193_v48 }
  0x48   :  { %1510 = vmatmul.mubr.bf16.vlgmr.msra.gmra.mxu0 %v516_v54  ;;  %1550 = vmatmul.mubr.bf16.vlgmr.msra.gmra.mxu1 %v518_v55  ;;  %v3213_v54 = vcombine.low %v682_v41, %v682_v41  ;;  %v3371_v55 = vld [vmem:[#allocation4 + $0x54] ss:$316 sps:$4 sm:$0xff]  }
  0x49   :  { %1570 = vmatpush1.bf16.xpose.msra.mxu0 %v3199_v56  ;;  %1610 = vmatpush1.bf16.xpose.msra.mxu1 %v3201_v57  ;;  %v3374_v56 = vld [vmem:[#allocation4 + $0x5c] ss:$316 sps:$4 sm:$0xff]   ;;  %v533_v57 = vpack.c.bf16 %v194_v49, %v194_v49 }
  0x4a   :  { %1571 = vmatprep.subr.bf16.mxu0 %v3338_v58  ;;  %1611 = vmatprep.subr.bf16.mxu1 %v3341_v59  ;;  %v535_v58 = vpack.c.bf16 %v195_v50, %v195_v50  ;;  %v60_v59 = vld [vmem:[#allocation2 + $0x30] sm:$0xff] }
  0x4b   :  { %1589 = vmatprep.mubr.bf16.mxu0 %v521_v60  ;;  %1629 = vmatprep.mubr.bf16.mxu1 %v523_v61  ;;  %v683_v60 = vld [vmem:[#allocation4 + $0x2d8] sm:$0xff]  ;;  %v684_v61 = vld [vmem:[#allocation4 + $0x2e0] sm:$0xff]  ;;  %v196_v62 = vcombine.high %v60_v59, %v60_v59 }
  0x4c   :  { %v3216_v1 = vcombine.high %v683_v60, %v683_v60  ;;  %v3215_v10 = vcombine.low %v683_v60, %v683_v60  ;;  %v3394_v41 = vld [vmem:[#allocation4 + $0x78] ss:$316 sps:$4 sm:$0xff]   ;;  %v3402_v60 = vld [vmem:[#allocation4 + $0x80] ss:$316 sps:$4 sm:$0xff]  }
  0x51   :  { %1572 = vmatpush1.bf16.xpose.msra.mxu0 %v3336_v2  ;;  %1612 = vmatpush1.bf16.xpose.msra.mxu1 %v3339_v3  ;;  %v3218_v2 = vcombine.high %v684_v61, %v684_v61  ;;  %v203_v3 = vrot.slane %v60_v59, %v3634_v7 }
  0x52   :  { %1649 = vmatprep.subr.bf16.mxu0 %v3204_v4  ;;  %1689 = vmatprep.subr.bf16.mxu1 %v3206_v5  ;;  %v210_v4 = vrot.slane %v196_v62, %v3634_v7 }
  0x53   :  { %v211_v5 = vcombine.high %v203_v3, %v203_v3  ;;  %v536_v28 = vpack.c.bf16 %v203_v3, %v203_v3 }
  0x54   :  { %v212_v6 = vcombine.high %v210_v4, %v210_v4  ;;  %v538_v29 = vpack.c.bf16 %v210_v4, %v210_v4 }
  0x58   :  { %1590 = vmatmul.mubr.bf16.vlgmr.msra.gmra.mxu0 %v520_v11  ;;  %1630 = vmatmul.mubr.bf16.vlgmr.msra.gmra.mxu1 %v522_v12  ;;  %v3217_v11 = vcombine.low %v684_v61, %v684_v61  ;;  %v3382_v12 = vld [vmem:[#allocation4 + $0x64] ss:$316 sps:$4 sm:$0xff]  }
  0x59   :  { %1650 = vmatpush1.bf16.xpose.msra.mxu0 %v3203_v13  ;;  %1690 = vmatpush1.bf16.xpose.msra.mxu1 %v3205_v14  ;;  %v3385_v13 = vld [vmem:[#allocation4 + $0x6c] ss:$316 sps:$4 sm:$0xff]   ;;  %v537_v14 = vpack.c.bf16 %v211_v5, %v211_v5 }
  0x5a   :  { %1651 = vmatprep.subr.bf16.mxu0 %v3349_v15  ;;  %1691 = vmatprep.subr.bf16.mxu1 %v3352_v16  ;;  %v539_v15 = vpack.c.bf16 %v212_v6, %v212_v6  ;;  %v61_v16 = vld [vmem:[#allocation2 + $0x38] sm:$0xff]  ;;  %v3405_v61 = vld [vmem:[#allocation4 + $0x88] ss:$316 sps:$4 sm:$0xff]  }
  0x5b   :  { %1669 = vmatprep.mubr.bf16.mxu0 %v525_v18  ;;  %1709 = vmatprep.mubr.bf16.mxu1 %v527_v19  ;;  %v686_v18 = vld [vmem:[#allocation4 + $0x2f0] sm:$0xff]  ;;  %v213_v19 = vcombine.high %v61_v16, %v61_v16 }
  0x61   :  { %1652 = vmatpush1.bf16.xpose.msra.mxu0 %v3347_v23  ;;  %1692 = vmatpush1.bf16.xpose.msra.mxu1 %v3350_v24  ;;  %v3222_v23 = vcombine.high %v686_v18, %v686_v18  ;;  %v220_v24 = vrot.slane %v61_v16, %v3634_v7 }
  0x62   :  { %1729 = vmatprep.subr.bf16.mxu0 %v3208_v25  ;;  %1769 = vmatprep.subr.bf16.mxu1 %v3210_v26  ;;  %v227_v25 = vrot.slane %v213_v19, %v3634_v7 }
  0x63   :  { %v228_v26 = vcombine.high %v220_v24, %v220_v24  ;;  %v540_v48 = vpack.c.bf16 %v220_v24, %v220_v24 }
  0x64   :  { %v229_v27 = vcombine.high %v227_v25, %v227_v25  ;;  %v542_v49 = vpack.c.bf16 %v227_v25, %v227_v25 }
  0x68   :  { %1670 = vmatmul.mubr.bf16.vlgmr.msra.gmra.mxu0 %v524_v31  ;;  %1710 = vmatmul.mubr.bf16.vlgmr.msra.gmra.mxu1 %v526_v32  ;;  %v3221_v31 = vcombine.low %v686_v18, %v686_v18  ;;  %v3393_v32 = vld [vmem:[#allocation4 + $0x74] ss:$316 sps:$4 sm:$0xff]  }
  0x69   :  { %1730 = vmatpush1.bf16.xpose.msra.mxu0 %v3207_v33  ;;  %1770 = vmatpush1.bf16.xpose.msra.mxu1 %v3209_v34  ;;  %v3396_v33 = vld [vmem:[#allocation4 + $0x7c] ss:$316 sps:$4 sm:$0xff]   ;;  %v541_v34 = vpack.c.bf16 %v228_v26, %v228_v26 }
  0x6a   :  { %1731 = vmatprep.subr.bf16.mxu0 %v3360_v35  ;;  %1771 = vmatprep.subr.bf16.mxu1 %v3363_v36  ;;  %v543_v35 = vpack.c.bf16 %v229_v27, %v229_v27  ;;  %v62_v36 = vld [vmem:[#allocation2 + $0x40] sm:$0xff]  ;;  %v3416_v18 = vld [vmem:[#allocation4 + $0x98] ss:$316 sps:$4 sm:$0xff]  }
  0x6b   :  { %1749 = vmatprep.mubr.bf16.mxu0 %v529_v37  ;;  %1789 = vmatprep.mubr.bf16.mxu1 %v531_v38  ;;  %v687_v37 = vld [vmem:[#allocation4 + $0x2f8] sm:$0xff]  ;;  %v688_v38 = vld [vmem:[#allocation4 + $0x300] sm:$0xff]  ;;  %v230_v39 = vcombine.high %v62_v36, %v62_v36 }
  0x6c   :  { %v3224_v42 = vcombine.high %v687_v37, %v687_v37  ;;  %v3223_v50 = vcombine.low %v687_v37, %v687_v37  ;;  %v3424_v37 = vld [vmem:[#allocation4 + $0xa0] ss:$316 sps:$4 sm:$0xff]  }
  0x71   :  { %1732 = vmatpush1.bf16.xpose.msra.mxu0 %v3358_v43  ;;  %1772 = vmatpush1.bf16.xpose.msra.mxu1 %v3361_v44  ;;  %v3226_v43 = vcombine.high %v688_v38, %v688_v38  ;;  %v237_v44 = vrot.slane %v62_v36, %v3634_v7 }
  0x72   :  { %1809 = vmatprep.subr.bf16.mxu0 %v3212_v45  ;;  %1849 = vmatprep.subr.bf16.mxu1 %v3214_v46  ;;  %v244_v45 = vrot.slane %v230_v39, %v3634_v7 }
  0x73   :  { %v245_v46 = vcombine.high %v237_v44, %v237_v44  ;;  %v544_v4 = vpack.c.bf16 %v237_v44, %v237_v44 }
  0x74   :  { %v246_v47 = vcombine.high %v244_v45, %v244_v45  ;;  %v546_v5 = vpack.c.bf16 %v244_v45, %v244_v45 }
  0x78   :  { %1750 = vmatmul.mubr.bf16.vlgmr.msra.gmra.mxu0 %v528_v51  ;;  %1790 = vmatmul.mubr.bf16.vlgmr.msra.gmra.mxu1 %v530_v52  ;;  %v3225_v51 = vcombine.low %v688_v38, %v688_v38  ;;  %v3404_v52 = vld [vmem:[#allocation4 + $0x84] ss:$316 sps:$4 sm:$0xff]  }
  0x79   :  { %1810 = vmatpush1.bf16.xpose.msra.mxu0 %v3211_v53  ;;  %1850 = vmatpush1.bf16.xpose.msra.mxu1 %v3213_v54  ;;  %v3407_v53 = vld [vmem:[#allocation4 + $0x8c] ss:$316 sps:$4 sm:$0xff]   ;;  %v545_v54 = vpack.c.bf16 %v245_v46, %v245_v46 }
  0x7a   :  { %1811 = vmatprep.subr.bf16.mxu0 %v3371_v55  ;;  %1851 = vmatprep.subr.bf16.mxu1 %v3374_v56  ;;  %v547_v55 = vpack.c.bf16 %v246_v47, %v246_v47  ;;  %v63_v56 = vld [vmem:[#allocation2 + $0x48] sm:$0xff] }
  0x7b   :  { %1829 = vmatprep.mubr.bf16.mxu0 %v533_v57  ;;  %1869 = vmatprep.mubr.bf16.mxu1 %v535_v58  ;;  %v689_v57 = vld [vmem:[#allocation4 + $0x308] sm:$0xff]  ;;  %v690_v58 = vld [vmem:[#allocation4 + $0x310] sm:$0xff]  ;;  %v247_v59 = vcombine.high %v63_v56, %v63_v56 }
  0x7c   :  { %v3228_v62 = vcombine.high %v689_v57, %v689_v57  ;;  %v3227_v6 = vcombine.low %v689_v57, %v689_v57  ;;  %v3427_v38 = vld [vmem:[#allocation4 + $0xa8] ss:$316 sps:$4 sm:$0xff]   ;;  %v3435_v57 = vld [vmem:[#allocation4 + $0xb0] ss:$316 sps:$4 sm:$0xff]  }
  0x81   :  { %1812 = vmatpush1.bf16.xpose.msra.mxu0 %v3369_v63  ;;  %1852 = vmatpush1.bf16.xpose.msra.mxu1 %v3372_v0  ;;  %v3230_v63 = vcombine.high %v690_v58, %v690_v58  ;;  %v254_v0 = vrot.slane %v63_v56, %v3634_v7 }
  0x82   :  { %1889 = vmatprep.subr.bf16.mxu0 %v3216_v1  ;;  %1929 = vmatprep.subr.bf16.mxu1 %v3218_v2  ;;  %v261_v1 = vrot.slane %v247_v59, %v3634_v7 }
  0x83   :  { %v262_v2 = vcombine.high %v254_v0, %v254_v0  ;;  %v548_v25 = vpack.c.bf16 %v254_v0, %v254_v0 }
  0x84   :  { %v263_v3 = vcombine.high %v261_v1, %v261_v1  ;;  %v550_v26 = vpack.c.bf16 %v261_v1, %v261_v1 }
  0x88   :  { %1830 = vmatmul.mubr.bf16.vlgmr.msra.gmra.mxu0 %v532_v8  ;;  %1870 = vmatmul.mubr.bf16.vlgmr.msra.gmra.mxu1 %v534_v9  ;;  %v3229_v8 = vcombine.low %v690_v58, %v690_v58  ;;  %v3415_v9 = vld [vmem:[#allocation4 + $0x94] ss:$316 sps:$4 sm:$0xff]  }
  0x89   :  { %1890 = vmatpush1.bf16.xpose.msra.mxu0 %v3215_v10  ;;  %1930 = vmatpush1.bf16.xpose.msra.mxu1 %v3217_v11  ;;  %v3418_v10 = vld [vmem:[#allocation4 + $0x9c] ss:$316 sps:$4 sm:$0xff]   ;;  %v549_v11 = vpack.c.bf16 %v262_v2, %v262_v2 }
  0x8a   :  { %1891 = vmatprep.subr.bf16.mxu0 %v3382_v12  ;;  %1931 = vmatprep.subr.bf16.mxu1 %v3385_v13  ;;  %v551_v12 = vpack.c.bf16 %v263_v3, %v263_v3  ;;  %v64_v13 = vld [vmem:[#allocation2 + $0x50] sm:$0xff] }
  0x8b   :  { %1909 = vmatprep.mubr.bf16.mxu0 %v537_v14  ;;  %1949 = vmatprep.mubr.bf16.mxu1 %v539_v15  ;;  %v691_v14 = vld [vmem:[#allocation4 + $0x318] sm:$0xff]  ;;  %v692_v15 = vld [vmem:[#allocation4 + $0x320] sm:$0xff]  ;;  %v264_v16 = vcombine.high %v64_v13, %v64_v13 }
  0x8c   :  { %v3232_v19 = vcombine.high %v691_v14, %v691_v14  ;;  %v3231_v27 = vcombine.low %v691_v14, %v691_v14  ;;  %v3438_v58 = vld [vmem:[#allocation4 + $0xb8] ss:$316 sps:$4 sm:$0xff]   ;;  %v3446_v14 = vld [vmem:[#allocation4 + $0xc0] ss:$316 sps:$4 sm:$0xff]  }
  0x91   :  { %1892 = vmatpush1.bf16.xpose.msra.mxu0 %v3380_v20  ;;  %1932 = vmatpush1.bf16.xpose.msra.mxu1 %v3383_v21  ;;  %v3234_v20 = vcombine.high %v692_v15, %v692_v15  ;;  %v271_v21 = vrot.slane %v64_v13, %v3634_v7 }
  0x92   :  { %1969 = vmatprep.subr.bf16.mxu0 %v3220_v22  ;;  %2009 = vmatprep.subr.bf16.mxu1 %v3222_v23  ;;  %v278_v22 = vrot.slane %v264_v16, %v3634_v7 }
  0x93   :  { %v279_v23 = vcombine.high %v271_v21, %v271_v21  ;;  %v552_v45 = vpack.c.bf16 %v271_v21, %v271_v21 }
  0x94   :  { %v280_v24 = vcombine.high %v278_v22, %v278_v22  ;;  %v554_v46 = vpack.c.bf16 %v278_v22, %v278_v22 }
  0x98   :  { %1910 = vmatmul.mubr.bf16.vlgmr.msra.gmra.mxu0 %v536_v28  ;;  %1950 = vmatmul.mubr.bf16.vlgmr.msra.gmra.mxu1 %v538_v29  ;;  %v3233_v28 = vcombine.low %v692_v15, %v692_v15  ;;  %v3426_v29 = vld [vmem:[#allocation4 + $0xa4] ss:$316 sps:$4 sm:$0xff]  }
  0x99   :  { %1970 = vmatpush1.bf16.xpose.msra.mxu0 %v3219_v30  ;;  %2010 = vmatpush1.bf16.xpose.msra.mxu1 %v3221_v31  ;;  %v3429_v30 = vld [vmem:[#allocation4 + $0xac] ss:$316 sps:$4 sm:$0xff]   ;;  %v553_v31 = vpack.c.bf16 %v279_v23, %v279_v23 }
  0x9a   :  { %1971 = vmatprep.subr.bf16.mxu0 %v3393_v32  ;;  %2011 = vmatprep.subr.bf16.mxu1 %v3396_v33  ;;  %v555_v32 = vpack.c.bf16 %v280_v24, %v280_v24  ;;  %v65_v33 = vld [vmem:[#allocation2 + $0x58] sm:$0xff]  ;;  %v3449_v15 = vld [vmem:[#allocation4 + $0xc8] ss:$316 sps:$4 sm:$0xff]  }
  0x9b   :  { %1989 = vmatprep.mubr.bf16.mxu0 %v541_v34  ;;  %2029 = vmatprep.mubr.bf16.mxu1 %v543_v35  ;;  %v693_v34 = vld [vmem:[#allocation4 + $0x328] sm:$0xff]  ;;  %v694_v35 = vld [vmem:[#allocation4 + $0x330] sm:$0xff]  ;;  %v281_v36 = vcombine.high %v65_v33, %v65_v33 }
  0x9c   :  { %v3236_v39 = vcombine.high %v693_v34, %v693_v34  ;;  %v3235_v47 = vcombine.low %v693_v34, %v693_v34 }
  0xa1   :  { %1972 = vmatpush1.bf16.xpose.msra.mxu0 %v3391_v40  ;;  %2012 = vmatpush1.bf16.xpose.msra.mxu1 %v3394_v41  ;;  %v3238_v40 = vcombine.high %v694_v35, %v694_v35  ;;  %v288_v41 = vrot.slane %v65_v33, %v3634_v7  ;;  %v68_v33 = vld [vmem:[#allocation2 + $0x70] sm:$0xff] }
  0xa2   :  { %2049 = vmatprep.subr.bf16.mxu0 %v3224_v42  ;;  %2089 = vmatprep.subr.bf16.mxu1 %v3226_v43  ;;  %v295_v42 = vrot.slane %v281_v36, %v3634_v7 }
  0xa3   :  { %v296_v43 = vcombine.high %v288_v41, %v288_v41  ;;  %v556_v1 = vpack.c.bf16 %v288_v41, %v288_v41 }
  0xa4   :  { %v297_v44 = vcombine.high %v295_v42, %v295_v42  ;;  %v558_v2 = vpack.c.bf16 %v295_v42, %v295_v42 }
  0xa8   :  { %1990 = vmatmul.mubr.bf16.vlgmr.msra.gmra.mxu0 %v540_v48  ;;  %2030 = vmatmul.mubr.bf16.vlgmr.msra.gmra.mxu1 %v542_v49  ;;  %v3237_v48 = vcombine.low %v694_v35, %v694_v35  ;;  %v3437_v49 = vld [vmem:[#allocation4 + $0xb4] ss:$316 sps:$4 sm:$0xff]  }
  0xa9   :  { %2050 = vmatpush1.bf16.xpose.msra.mxu0 %v3223_v50  ;;  %2090 = vmatpush1.bf16.xpose.msra.mxu1 %v3225_v51  ;;  %v3440_v50 = vld [vmem:[#allocation4 + $0xbc] ss:$316 sps:$4 sm:$0xff]   ;;  %v557_v51 = vpack.c.bf16 %v296_v43, %v296_v43  ;;  %v3457_v43 = vld [vmem:[#allocation4 + $0xd0] ss:$316 sps:$4 sm:$0xff]  }
  0xaa   :  { %2051 = vmatprep.subr.bf16.mxu0 %v3404_v52  ;;  %2091 = vmatprep.subr.bf16.mxu1 %v3407_v53  ;;  %v559_v52 = vpack.c.bf16 %v297_v44, %v297_v44  ;;  %v66_v53 = vld [vmem:[#allocation2 + $0x60] sm:$0xff]  ;;  %v3460_v44 = vld [vmem:[#allocation4 + $0xd8] ss:$316 sps:$4 sm:$0xff]  }
  0xab   :  { %2069 = vmatprep.mubr.bf16.mxu0 %v545_v54  ;;  %2109 = vmatprep.mubr.bf16.mxu1 %v547_v55  ;;  %v695_v54 = vld [vmem:[#allocation4 + $0x338] sm:$0xff]  ;;  %v696_v55 = vld [vmem:[#allocation4 + $0x340] sm:$0xff]  ;;  %v298_v56 = vcombine.high %v66_v53, %v66_v53 }
  0xac   :  { %v3240_v59 = vcombine.high %v695_v54, %v695_v54  ;;  %v3239_v3 = vcombine.low %v695_v54, %v695_v54 }
  0xb1   :  { %2052 = vmatpush1.bf16.xpose.msra.mxu0 %v3402_v60  ;;  %2092 = vmatpush1.bf16.xpose.msra.mxu1 %v3405_v61  ;;  %v3242_v60 = vcombine.high %v696_v55, %v696_v55  ;;  %v305_v61 = vrot.slane %v66_v53, %v3634_v7 }
  0xb2   :  { %2129 = vmatprep.subr.bf16.mxu0 %v3228_v62  ;;  %2169 = vmatprep.subr.bf16.mxu1 %v3230_v63  ;;  %v312_v62 = vrot.slane %v298_v56, %v3634_v7 }
  0xb3   :  { %v313_v63 = vcombine.high %v305_v61, %v305_v61  ;;  %v560_v22 = vpack.c.bf16 %v305_v61, %v305_v61 }
  0xb4   :  { %v314_v0 = vcombine.high %v312_v62, %v312_v62  ;;  %v562_v23 = vpack.c.bf16 %v312_v62, %v312_v62 }
  0xb8   :  { %2070 = vmatmul.mubr.bf16.vlgmr.msra.gmra.mxu0 %v544_v4  ;;  %2110 = vmatmul.mubr.bf16.vlgmr.msra.gmra.mxu1 %v546_v5  ;;  %v3241_v4 = vcombine.low %v696_v55, %v696_v55  ;;  %v3448_v5 = vld [vmem:[#allocation4 + $0xc4] ss:$316 sps:$4 sm:$0xff]  }
  0xb9   :  { %2130 = vmatpush1.bf16.xpose.msra.mxu0 %v3227_v6  ;;  %2170 = vmatpush1.bf16.xpose.msra.mxu1 %v3229_v8  ;;  %v3451_v6 = vld [vmem:[#allocation4 + $0xcc] ss:$316 sps:$4 sm:$0xff]   ;;  %v561_v8 = vpack.c.bf16 %v313_v63, %v313_v63  ;;  %v69_v63 = vld [vmem:[#allocation2 + $0x78] sm:$0xff] }
  0xba   :  { %2131 = vmatprep.subr.bf16.mxu0 %v3415_v9  ;;  %2171 = vmatprep.subr.bf16.mxu1 %v3418_v10  ;;  %v563_v9 = vpack.c.bf16 %v314_v0, %v314_v0  ;;  %v67_v10 = vld [vmem:[#allocation2 + $0x68] sm:$0xff] }
  0xbb   :  { %2149 = vmatprep.mubr.bf16.mxu0 %v549_v11  ;;  %2189 = vmatprep.mubr.bf16.mxu1 %v551_v12  ;;  %v697_v11 = vld [vmem:[#allocation4 + $0x348] sm:$0xff]  ;;  %v698_v12 = vld [vmem:[#allocation4 + $0x350] sm:$0xff]  ;;  %v315_v13 = vcombine.high %v67_v10, %v67_v10 }
  0xbc   :  { %v3244_v16 = vcombine.high %v697_v11, %v697_v11  ;;  %v3243_v24 = vcombine.low %v697_v11, %v697_v11  ;;  %v3471_v11 = vld [vmem:[#allocation4 + $0xe8] ss:$316 sps:$4 sm:$0xff]  }
  0xc1   :  { %2132 = vmatpush1.bf16.xpose.msra.mxu0 %v3413_v17  ;;  %2172 = vmatpush1.bf16.xpose.msra.mxu1 %v3416_v18  ;;  %v3246_v17 = vcombine.high %v698_v12, %v698_v12  ;;  %v322_v18 = vrot.slane %v67_v10, %v3634_v7  ;;  %v3468_v10 = vld [vmem:[#allocation4 + $0xe0] ss:$316 sps:$4 sm:$0xff]  }
  0xc2   :  { %2209 = vmatprep.subr.bf16.mxu0 %v3232_v19  ;;  %2249 = vmatprep.subr.bf16.mxu1 %v3234_v20  ;;  %v329_v19 = vrot.slane %v315_v13, %v3634_v7 }
  0xc3   :  { %v330_v20 = vcombine.high %v322_v18, %v322_v18  ;;  %v564_v53 = vpack.c.bf16 %v322_v18, %v322_v18 }
  0xc4   :  { %v331_v21 = vcombine.high %v329_v19, %v329_v19  ;;  %v566_v54 = vpack.c.bf16 %v329_v19, %v329_v19 }
  0xc8   :  { %2150 = vmatmul.mubr.bf16.vlgmr.msra.gmra.mxu0 %v548_v25  ;;  %2190 = vmatmul.mubr.bf16.vlgmr.msra.gmra.mxu1 %v550_v26  ;;  %v3245_v25 = vcombine.low %v698_v12, %v698_v12  ;;  %v3111_v26 = vld [vmem:[#allocation6 + $0x18] ss:$0 sm:$0xff] }
  0xc9   :  { %2210 = vmatpush1.bf16.xpose.msra.mxu0 %v3231_v27  ;;  %2250 = vmatpush1.bf16.xpose.msra.mxu1 %v3233_v28  ;;  %v3459_v27 = vld [vmem:[#allocation4 + $0xd4] ss:$316 sps:$4 sm:$0xff]   ;;  %v3462_v28 = vld [vmem:[#allocation4 + $0xdc] ss:$316 sps:$4 sm:$0xff]  }
  0xca   :  { %2211 = vmatprep.subr.bf16.mxu0 %v3426_v29  ;;  %2251 = vmatprep.subr.bf16.mxu1 %v3429_v30  ;;  %v565_v29 = vpack.c.bf16 %v330_v20, %v330_v20  ;;  %v567_v30 = vpack.c.bf16 %v331_v21, %v331_v21 }
  0xcb   :  { %2229 = vmatprep.mubr.bf16.mxu0 %v553_v31  ;;  %2269 = vmatprep.mubr.bf16.mxu1 %v555_v32 }
  0xd1   :  { %2212 = vmatpush1.bf16.xpose.msra.mxu0 %v3424_v37  ;;  %2252 = vmatpush1.bf16.xpose.msra.mxu1 %v3427_v38  ;;  %v699_v38 = vld [vmem:[#allocation4 + $0x358] sm:$0xff] }
  0xd2   :  { %2289 = vmatprep.subr.bf16.mxu0 %v3236_v39  ;;  %2329 = vmatprep.subr.bf16.mxu1 %v3238_v40  ;;  %v700_v39 = vld [vmem:[#allocation4 + $0x360] sm:$0xff]  ;;  %v332_v40 = vcombine.high %v68_v33, %v68_v33  ;;  %v3247_v55 = vcombine.low %v699_v38, %v699_v38 }
  0xd3   :  { %v3249_v56 = vcombine.low %v700_v39, %v700_v39 }
  0xd8   :  { %2230 = vmatmul.mubr.bf16.vlgmr.msra.gmra.mxu0 %v552_v45  ;;  %2270 = vmatmul.mubr.bf16.vlgmr.msra.gmra.mxu1 %v554_v46 }
  0xd9   :  { %2290 = vmatpush1.bf16.xpose.msra.mxu0 %v3235_v47  ;;  %2330 = vmatpush1.bf16.xpose.msra.mxu1 %v3237_v48  ;;  %v3248_v47 = vcombine.high %v699_v38, %v699_v38  ;;  %v3250_v48 = vcombine.high %v700_v39, %v700_v39 }
  0xda   :  { %2291 = vmatprep.subr.bf16.mxu0 %v3437_v49  ;;  %2331 = vmatprep.subr.bf16.mxu1 %v3440_v50  ;;  %v339_v49 = vrot.slane %v68_v33, %v3634_v7  ;;  %v346_v50 = vrot.slane %v332_v40, %v3634_v7  ;;  %v3479_v40 = vld [vmem:[#allocation4 + $0xf0] ss:$316 sps:$4 sm:$0xff]  }
  0xdb   :  { %2309 = vmatprep.mubr.bf16.mxu0 %v557_v51  ;;  %2349 = vmatprep.mubr.bf16.mxu1 %v559_v52 }
  0xdc   :  { %v347_v51 = vcombine.high %v339_v49, %v339_v49  ;;  %v348_v52 = vcombine.high %v346_v50, %v346_v50  ;;  %v568_v20 = vpack.c.bf16 %v339_v49, %v339_v49  ;;  %v570_v21 = vpack.c.bf16 %v346_v50, %v346_v50 }
  0xe1   :  { %2292 = vmatpush1.bf16.xpose.msra.mxu0 %v3435_v57  ;;  %2332 = vmatpush1.bf16.xpose.msra.mxu1 %v3438_v58  ;;  %v3470_v57 = vld [vmem:[#allocation4 + $0xe4] ss:$316 sps:$4 sm:$0xff]   ;;  %v3473_v58 = vld [vmem:[#allocation4 + $0xec] ss:$316 sps:$4 sm:$0xff]  }
  0xe2   :  { %2369 = vmatprep.subr.bf16.mxu0 %v3240_v59  ;;  %2409 = vmatprep.subr.bf16.mxu1 %v3242_v60  ;;  %v569_v59 = vpack.c.bf16 %v347_v51, %v347_v51  ;;  %v571_v60 = vpack.c.bf16 %v348_v52, %v348_v52 }
  0xe8   :  { %2310 = vmatmul.mubr.bf16.vlgmr.msra.gmra.mxu0 %v556_v1  ;;  %2350 = vmatmul.mubr.bf16.vlgmr.msra.gmra.mxu1 %v558_v2 }
  0xe9   :  { %2370 = vmatpush1.bf16.xpose.msra.mxu0 %v3239_v3  ;;  %2410 = vmatpush1.bf16.xpose.msra.mxu1 %v3241_v4  ;;  %v701_v4 = vld [vmem:[#allocation4 + $0x368] sm:$0xff] }
  0xea   :  { %2371 = vmatprep.subr.bf16.mxu0 %v3448_v5  ;;  %2411 = vmatprep.subr.bf16.mxu1 %v3451_v6  ;;  %v702_v5 = vld [vmem:[#allocation4 + $0x370] sm:$0xff]  ;;  %v349_v6 = vcombine.high %v69_v63, %v69_v63 }
  0xeb   :  { %2389 = vmatprep.mubr.bf16.mxu0 %v561_v8  ;;  %2429 = vmatprep.mubr.bf16.mxu1 %v563_v9 }
  0xf1   :  { %2372 = vmatpush1.bf16.xpose.msra.mxu0 %v3446_v14  ;;  %2412 = vmatpush1.bf16.xpose.msra.mxu1 %v3449_v15  ;;  %v3252_v14 = vcombine.high %v701_v4, %v701_v4  ;;  %v3254_v15 = vcombine.high %v702_v5, %v702_v5 }
  0xf2   :  { %2449 = vmatprep.subr.bf16.mxu0 %v3244_v16  ;;  %2489 = vmatprep.subr.bf16.mxu1 %v3246_v17  ;;  %v356_v16 = vrot.slane %v69_v63, %v3634_v7  ;;  %v363_v17 = vrot.slane %v349_v6, %v3634_v7  ;;  %v3490_v6 = vld [vmem:[#allocation4 + $0x100] ss:$316 sps:$4 sm:$0xff]  }
  0xf4   :  { %v364_v18 = vcombine.high %v356_v16, %v356_v16  ;;  %v365_v19 = vcombine.high %v363_v17, %v363_v17  ;;  %v572_v50 = vpack.c.bf16 %v356_v16, %v356_v16  ;;  %v574_v51 = vpack.c.bf16 %v363_v17, %v363_v17 }
  0xf8   :  { %v1431_v31 = vpop.f32.mrf.mxu0  ;;  %v1471_v32 = vpop.f32.mrf.mxu1  ;;  %2390 = vmatmul.mubr.bf16.vlgmr.msra.gmra.mxu0 %v560_v22  ;;  %2430 = vmatmul.mubr.bf16.vlgmr.msra.gmra.mxu1 %v562_v23  ;;  %v3251_v22 = vcombine.low %v701_v4, %v701_v4  ;;  %v3253_v23 = vcombine.low %v702_v5, %v702_v5 }
  0xf9   :  { %v1432_v34 = vadd.f32 %v3111_v26, %v1431_v31  ;;  %2450 = vmatpush1.bf16.xpose.msra.mxu0 %v3243_v24  ;;  %2490 = vmatpush1.bf16.xpose.msra.mxu1 %v3245_v25  ;;  %v3481_v24 = vld [vmem:[#allocation4 + $0xf4] ss:$316 sps:$4 sm:$0xff]   ;;  %v3484_v25 = vld [vmem:[#allocation4 + $0xfc] ss:$316 sps:$4 sm:$0xff]   ;;  %v573_v26 = vpack.c.bf16 %v364_v18, %v364_v18 }
  0xfa   :  { %v1433_v35 = vpop.f32.mrf.mxu0  ;;  %v1473_v36 = vpop.f32.mrf.mxu1  ;;  %2451 = vmatprep.subr.bf16.mxu0 %v3459_v27  ;;  %2491 = vmatprep.subr.bf16.mxu1 %v3462_v28  ;;  %v575_v27 = vpack.c.bf16 %v365_v19, %v365_v19 }
  0xfb   :  { %v1472_v37 = vadd.f32 %v1471_v32, %v1432_v34  ;;  %2469 = vmatprep.mubr.bf16.mxu0 %v565_v29  ;;  %2509 = vmatprep.mubr.bf16.mxu1 %v567_v30  ;;  %v70_v30 = vld [vmem:[#allocation2 + $0x80] sm:$0xff]  ;;  %v703_v35 = vld [vmem:[#allocation4 + $0x378] sm:$0xff] }
  0xfc   :  { %v1434_v41 = vpop.f32.mrf.mxu0  ;;  %v1474_v42 = vpop.f32.mrf.mxu1  ;;  %v704_v36 = vld [vmem:[#allocation4 + $0x380] sm:$0xff]  ;;  %v3255_v52 = vcombine.low %v703_v35, %v703_v35 }
  0xfd   :  { %v3482_v41 = vld [vmem:[#allocation4 + $0xf8] ss:$316 sps:$4 sm:$0xff]  }
  0xfe   :  { %v1435_v45 = vpop.f32.mrf.mxu0  ;;  %v1475_v46 = vpop.f32.mrf.mxu1 }
  0xff   :  { %v3258_v45 = vcombine.high %v704_v36, %v704_v36  ;;  %v373_v46 = vrot.slane %v70_v30, %v3634_v7 }
 0x101   :  { %2452 = vmatpush1.bf16.xpose.msra.mxu0 %v3457_v43  ;;  %2492 = vmatpush1.bf16.xpose.msra.mxu1 %v3460_v44  ;;  %v3256_v44 = vcombine.high %v703_v35, %v703_v35  ;;  %v576_v17 = vpack.c.bf16 %v373_v46, %v373_v46 }
 0x102   :  { %2529 = vmatprep.subr.bf16.mxu0 %v3248_v47  ;;  %2569 = vmatprep.subr.bf16.mxu1 %v3250_v48  ;;  %v381_v48 = vcombine.high %v373_v46, %v373_v46 }
 0x108   :  { %v1511_v61 = vpop.f32.mrf.mxu0  ;;  %v1551_v62 = vpop.f32.mrf.mxu1  ;;  %2470 = vmatmul.mubr.bf16.vlgmr.msra.gmra.mxu0 %v564_v53  ;;  %2510 = vmatmul.mubr.bf16.vlgmr.msra.gmra.mxu1 %v566_v54  ;;  %v3257_v53 = vcombine.low %v704_v36, %v704_v36  ;;  %v3492_v54 = vld [vmem:[#allocation4 + $0x104] ss:$316 sps:$4 sm:$0xff]  }
 0x109   :  { %v1512_v0 = vadd.f32 %v1511_v61, %v1472_v37  ;;  %2530 = vmatpush1.bf16.xpose.msra.mxu0 %v3247_v55  ;;  %2570 = vmatpush1.bf16.xpose.msra.mxu1 %v3249_v56  ;;  %v366_v37 = vcombine.high %v70_v30, %v70_v30  ;;  %v3495_v55 = vld [vmem:[#allocation4 + $0x10c] ss:$316 sps:$4 sm:$0xff]   ;;  %v577_v56 = vpack.c.bf16 %v381_v48, %v381_v48 }
 0x10a   :  { %v1513_v1 = vpop.f32.mrf.mxu0  ;;  %v1553_v2 = vpop.f32.mrf.mxu1  ;;  %2531 = vmatprep.subr.bf16.mxu0 %v3470_v57  ;;  %2571 = vmatprep.subr.bf16.mxu1 %v3473_v58 }
 0x10b   :  { %v1552_v3 = vadd.f32 %v1551_v62, %v1512_v0  ;;  %2549 = vmatprep.mubr.bf16.mxu0 %v569_v59  ;;  %2589 = vmatprep.mubr.bf16.mxu1 %v571_v60  ;;  %v380_v47 = vrot.slane %v366_v37, %v3634_v7  ;;  %v71_v60 = vld [vmem:[#allocation2 + $0x88] sm:$0xff] }
 0x10c   :  { %v1514_v8 = vpop.f32.mrf.mxu0  ;;  %v1554_v9 = vpop.f32.mrf.mxu1  ;;  %v705_v1 = vld [vmem:[#allocation4 + $0x388] sm:$0xff]  ;;  %v706_v2 = vld [vmem:[#allocation4 + $0x390] sm:$0xff] }
 0x10d   :  { %v382_v49 = vcombine.high %v380_v47, %v380_v47  ;;  %v3493_v8 = vld [vmem:[#allocation4 + $0x108] ss:$316 sps:$4 sm:$0xff]   ;;  %v578_v18 = vpack.c.bf16 %v380_v47, %v380_v47  ;;  %v3259_v19 = vcombine.low %v705_v1, %v705_v1  ;;  %v3501_v37 = vld [vmem:[#allocation4 + $0x110] ss:$316 sps:$4 sm:$0xff]  }
 0x10e   :  { %v1515_v12 = vpop.f32.mrf.mxu0  ;;  %v1555_v13 = vpop.f32.mrf.mxu1 }
 0x10f   :  { %v579_v57 = vpack.c.bf16 %v382_v49, %v382_v49  ;;  %v3262_v12 = vcombine.high %v706_v2, %v706_v2  ;;  %v390_v13 = vrot.slane %v71_v60, %v3634_v7 }
 0x111   :  { %2532 = vmatpush1.bf16.xpose.msra.mxu0 %v3468_v10  ;;  %2572 = vmatpush1.bf16.xpose.msra.mxu1 %v3471_v11  ;;  %v3260_v11 = vcombine.high %v705_v1, %v705_v1  ;;  %v580_v47 = vpack.c.bf16 %v390_v13, %v390_v13  ;;  %v3512_v1 = vld [vmem:[#allocation4 + $0x120] ss:$316 sps:$4 sm:$0xff]  }
 0x112   :  { %2609 = vmatprep.subr.bf16.mxu0 %v3252_v14  ;;  %2649 = vmatprep.subr.bf16.mxu1 %v3254_v15  ;;  %v398_v15 = vcombine.high %v390_v13, %v390_v13 }
 0x118   :  { %v1591_v28 = vpop.f32.mrf.mxu0  ;;  %v1631_v29 = vpop.f32.mrf.mxu1  ;;  %2550 = vmatmul.mubr.bf16.vlgmr.msra.gmra.mxu0 %v568_v20  ;;  %2590 = vmatmul.mubr.bf16.vlgmr.msra.gmra.mxu1 %v570_v21  ;;  %v3261_v20 = vcombine.low %v706_v2, %v706_v2  ;;  %v3503_v21 = vld [vmem:[#allocation4 + $0x114] ss:$316 sps:$4 sm:$0xff]   ;;  %v3515_v2 = vld [vmem:[#allocation4 + $0x128] ss:$316 sps:$4 sm:$0xff]  }
 0x119   :  { %v1592_v31 = vadd.f32 %v1591_v28, %v1552_v3  ;;  %2610 = vmatpush1.bf16.xpose.msra.mxu0 %v3251_v22  ;;  %2650 = vmatpush1.bf16.xpose.msra.mxu1 %v3253_v23  ;;  %v383_v3 = vcombine.high %v71_v60, %v71_v60  ;;  %v3506_v22 = vld [vmem:[#allocation4 + $0x11c] ss:$316 sps:$4 sm:$0xff]   ;;  %v581_v23 = vpack.c.bf16 %v398_v15, %v398_v15  ;;  %v3524_v15 = vld [vmem:[#allocation4 + $0x134] ss:$316 sps:$4 sm:$0xff]  }
 0x11a   :  { %v1593_v32 = vpop.f32.mrf.mxu0  ;;  %v1633_v33 = vpop.f32.mrf.mxu1  ;;  %2611 = vmatprep.subr.bf16.mxu0 %v3481_v24  ;;  %2651 = vmatprep.subr.bf16.mxu1 %v3484_v25 }
 0x11b   :  { %v1632_v34 = vadd.f32 %v1631_v29, %v1592_v31  ;;  %2629 = vmatprep.mubr.bf16.mxu0 %v573_v26  ;;  %2669 = vmatprep.mubr.bf16.mxu1 %v575_v27  ;;  %v397_v14 = vrot.slane %v383_v3, %v3634_v7  ;;  %v72_v27 = vld [vmem:[#allocation2 + $0x90] sm:$0xff]  ;;  %v708_v33 = vld [vmem:[#allocation4 + $0x3a0] sm:$0xff] }
 0x11c   :  { %v1594_v38 = vpop.f32.mrf.mxu0  ;;  %v1634_v39 = vpop.f32.mrf.mxu1  ;;  %v707_v32 = vld [vmem:[#allocation4 + $0x398] sm:$0xff] }
 0x11d   :  { %v399_v16 = vcombine.high %v397_v14, %v397_v14  ;;  %v3504_v38 = vld [vmem:[#allocation4 + $0x118] ss:$316 sps:$4 sm:$0xff]   ;;  %v582_v48 = vpack.c.bf16 %v397_v14, %v397_v14  ;;  %v3263_v49 = vcombine.low %v707_v32, %v707_v32 }
 0x11e   :  { %v1595_v42 = vpop.f32.mrf.mxu0  ;;  %v1635_v43 = vpop.f32.mrf.mxu1 }
 0x11f   :  { %v583_v24 = vpack.c.bf16 %v399_v16, %v399_v16  ;;  %v3266_v42 = vcombine.high %v708_v33, %v708_v33  ;;  %v407_v43 = vrot.slane %v72_v27, %v3634_v7 }
 0x121   :  { %2612 = vmatpush1.bf16.xpose.msra.mxu0 %v3479_v40  ;;  %2652 = vmatpush1.bf16.xpose.msra.mxu1 %v3482_v41  ;;  %v3264_v41 = vcombine.high %v707_v32, %v707_v32 }
 0x122   :  { %2689 = vmatprep.subr.bf16.mxu0 %v3256_v44  ;;  %2729 = vmatprep.subr.bf16.mxu1 %v3258_v45  ;;  %v415_v45 = vcombine.high %v407_v43, %v407_v43 }
 0x128   :  { %v1671_v58 = vpop.f32.mrf.mxu0  ;;  %v1711_v59 = vpop.f32.mrf.mxu1  ;;  %2630 = vmatmul.mubr.bf16.vlgmr.msra.gmra.mxu0 %v572_v50  ;;  %2670 = vmatmul.mubr.bf16.vlgmr.msra.gmra.mxu1 %v574_v51  ;;  %v3265_v50 = vcombine.low %v708_v33, %v708_v33  ;;  %v3514_v51 = vld [vmem:[#allocation4 + $0x124] ss:$316 sps:$4 sm:$0xff]  }
 0x129   :  { %v1672_v61 = vadd.f32 %v1671_v58, %v1632_v34  ;;  %2690 = vmatpush1.bf16.xpose.msra.mxu0 %v3255_v52  ;;  %2730 = vmatpush1.bf16.xpose.msra.mxu1 %v3257_v53  ;;  %v400_v34 = vcombine.high %v72_v27, %v72_v27  ;;  %v3517_v52 = vld [vmem:[#allocation4 + $0x12c] ss:$316 sps:$4 sm:$0xff]   ;;  %v585_v53 = vpack.c.bf16 %v415_v45, %v415_v45 }
 0x12a   :  { %v1673_v62 = vpop.f32.mrf.mxu0  ;;  %v1713_v63 = vpop.f32.mrf.mxu1  ;;  %2691 = vmatprep.subr.bf16.mxu0 %v3492_v54  ;;  %2731 = vmatprep.subr.bf16.mxu1 %v3495_v55  ;;  %v3522_v27 = vld [vmem:[#allocation4 + $0x130] ss:$316 sps:$4 sm:$0xff]  }
 0x12b   :  { %v1712_v0 = vadd.f32 %v1711_v59, %v1672_v61  ;;  %2709 = vmatprep.mubr.bf16.mxu0 %v577_v56  ;;  %2749 = vmatprep.mubr.bf16.mxu1 %v579_v57  ;;  %v414_v44 = vrot.slane %v400_v34, %v3634_v7  ;;  %v709_v61 = vld [vmem:[#allocation4 + $0x3a8] sm:$0xff] }
 0x12c   :  { %v1674_v4 = vpop.f32.mrf.mxu0  ;;  %v1714_v5 = vpop.f32.mrf.mxu1  ;;  %v3267_v13 = vcombine.low %v709_v61, %v709_v61 }
 0x12d   :  { %v416_v46 = vcombine.high %v414_v44, %v414_v44  ;;  %v3268_v5 = vcombine.high %v709_v61, %v709_v61 }
 0x12e   :  { %v1675_v9 = vpop.f32.mrf.mxu0  ;;  %v1715_v10 = vpop.f32.mrf.mxu1 }
 0x12f   :  { %v587_v54 = vpack.c.bf16 %v416_v46, %v416_v46  ;;  %v3521_v9 = vld [vmem:[#allocation4 + $0x3b0] ss:$0 sps:$4 sm:$0xff]  }
 0x130   :  { %v1395_v14 = vsel %vm1387_vm0, %v3521_v9, 0 }
 0x131   :  { %2692 = vmatpush1.bf16.xpose.msra.mxu0 %v3490_v6  ;;  %2732 = vmatpush1.bf16.xpose.msra.mxu1 %v3493_v8  ;;  %v3603_v8 = vmov 0.0  }
 0x132   :  { %2769 = vmatprep.subr.bf16.mxu0 %v3260_v11  ;;  %2809 = vmatprep.subr.bf16.mxu1 %v3262_v12  ;;  %v584_v11 = vpack.c.bf16 %v407_v43, %v407_v43  ;;  %v586_v12 = vpack.c.bf16 %v414_v44, %v414_v44 }
 0x138   :  { %v1751_v25 = vpop.f32.mrf.mxu0  ;;  %v1791_v26 = vpop.f32.mrf.mxu1  ;;  %2710 = vmatmul.mubr.bf16.vlgmr.msra.gmra.mxu0 %v576_v17  ;;  %2750 = vmatmul.mubr.bf16.vlgmr.msra.gmra.mxu1 %v578_v18 }
 0x139   :  { %v1752_v28 = vadd.f32 %v1751_v25, %v1712_v0  ;;  %2770 = vmatpush1.bf16.xpose.msra.mxu0 %v3259_v19  ;;  %2810 = vmatpush1.bf16.xpose.msra.mxu1 %v3261_v20  ;;  %v73_v0 = vld [vmem:[#allocation2 + $0x98] sm:$0x3f] }
 0x13a   :  { %v1753_v29 = vpop.f32.mrf.mxu0  ;;  %v1793_v30 = vpop.f32.mrf.mxu1  ;;  %2771 = vmatprep.subr.bf16.mxu0 %v3503_v21  ;;  %2811 = vmatprep.subr.bf16.mxu1 %v3506_v22  ;;  %v424_v6 = vrot.slane %v73_v0, %v3634_v7  ;;  %v3525_v22 = vld [vmem:[#allocation4 + $0x138] ss:$316 sps:$4 sm:$0xff]  }
 0x13b   :  { %v1792_v31 = vadd.f32 %v1791_v26, %v1752_v28  ;;  %2789 = vmatprep.mubr.bf16.mxu0 %v581_v23  ;;  %2829 = vmatprep.mubr.bf16.mxu1 %v583_v24  ;;  %v417_v26 = vcombine.high %v73_v0, %v73_v0  ;;  %v1392_v30 = vsel %vm1387_vm0, %v3525_v22, 0 }
 0x13c   :  { %v1754_v35 = vpop.f32.mrf.mxu0  ;;  %v1794_v36 = vpop.f32.mrf.mxu1  ;;  %v432_v10 = vcombine.high %v424_v6, %v424_v6  ;;  %v588_v33 = vpack.c.bf16 %v424_v6, %v424_v6 }
 0x13e   :  { %v1755_v39 = vpop.f32.mrf.mxu0  ;;  %v1795_v40 = vpop.f32.mrf.mxu1  ;;  %v589_v16 = vpack.c.bf16 %v432_v10, %v432_v10 }
 0x141   :  { %2772 = vmatpush1.bf16.xpose.msra.mxu0 %v3501_v37  ;;  %2812 = vmatpush1.bf16.xpose.msra.mxu1 %v3504_v38 }
 0x142   :  { %2849 = vmatprep.subr.bf16.mxu0 %v3264_v41  ;;  %2889 = vmatprep.subr.bf16.mxu1 %v3266_v42 }
 0x148   :  { %v1831_v55 = vpop.f32.mrf.mxu0  ;;  %v1871_v56 = vpop.f32.mrf.mxu1  ;;  %2790 = vmatmul.mubr.bf16.vlgmr.msra.gmra.mxu0 %v580_v47  ;;  %2830 = vmatmul.mubr.bf16.vlgmr.msra.gmra.mxu1 %v582_v48 }
 0x149   :  { %v1832_v57 = vadd.f32 %v1831_v55, %v1792_v31  ;;  %2850 = vmatpush1.bf16.xpose.msra.mxu0 %v3263_v49  ;;  %2890 = vmatpush1.bf16.xpose.msra.mxu1 %v3265_v50  ;;  %v431_v31 = vrot.slane %v417_v26, %v3634_v7 }
 0x14a   :  { %v1833_v58 = vpop.f32.mrf.mxu0  ;;  %v1873_v59 = vpop.f32.mrf.mxu1  ;;  %2851 = vmatprep.subr.bf16.mxu0 %v3514_v51  ;;  %2891 = vmatprep.subr.bf16.mxu1 %v3517_v52 }
 0x14b   :  { %v1872_v60 = vadd.f32 %v1871_v56, %v1832_v57  ;;  %2869 = vmatprep.mubr.bf16.mxu0 %v585_v53  ;;  %2909 = vmatprep.mubr.bf16.mxu1 %v587_v54  ;;  %v590_v32 = vpack.c.bf16 %v431_v31, %v431_v31 }
 0x14c   :  { %v1834_v62 = vpop.f32.mrf.mxu0  ;;  %v1874_v63 = vpop.f32.mrf.mxu1 }
 0x14e   :  { %v1835_v3 = vpop.f32.mrf.mxu0  ;;  %v1875_v4 = vpop.f32.mrf.mxu1 }
 0x151   :  { %2852 = vmatpush1.bf16.xpose.msra.mxu0 %v3512_v1  ;;  %2892 = vmatpush1.bf16.xpose.msra.mxu1 %v3515_v2 }
 0x152   :  { %2929 = vmatprep.subr.bf16.mxu0 %v3268_v5  ;;  %3283 = vmatprep.subr.bf16.mxu1 %v3603_v8 }
 0x158   :  { %v1911_v17 = vpop.f32.mrf.mxu0  ;;  %v1951_v18 = vpop.f32.mrf.mxu1  ;;  %2870 = vmatmul.mubr.bf16.vlgmr.msra.gmra.mxu0 %v584_v11  ;;  %2910 = vmatmul.mubr.bf16.vlgmr.msra.gmra.mxu1 %v586_v12  ;;  %v3000_v11 = vld [vmem:[#allocation6 + $0x10] sm:$0xff] }
 0x159   :  { %v1912_v19 = vadd.f32 %v1911_v17, %v1872_v60  ;;  %2930 = vmatpush1.bf16.xpose.msra.mxu0 %v3267_v13  ;;  %3284 = vmatpush3.bf16.xpose.msra.mxu1 %v1395_v14 }
 0x15a   :  { %v1913_v20 = vpop.f32.mrf.mxu0  ;;  %v1953_v21 = vpop.f32.mrf.mxu1  ;;  %2931 = vmatprep.subr.bf16.mxu0 %v3524_v15  ;;  %3285 = vmatprep.subr.bf16.mxu1 %v3603_v8 }
 0x15b   :  { %v1952_v23 = vadd.f32 %v1951_v18, %v1912_v19  ;;  %2949 = vmatprep.mubr.bf16.mxu0 %v589_v16  ;;  %3287 = vmatprep.mubr.msk.bf16.mxu1 %vm3604_vm1, %v3603_v8  ;;  %v2999_v18 = vld [vmem:[#allocation6 + $0x8] sm:$0xff]  ;;  %v2998_v21 = vld [vmem:[#allocation6] sm:$0xff] }
 0x15c   :  { %v1914_v24 = vpop.f32.mrf.mxu0  ;;  %v1954_v25 = vpop.f32.mrf.mxu1 }
 0x15e   :  { %v1915_v28 = vpop.f32.mrf.mxu0  ;;  %v1955_v29 = vpop.f32.mrf.mxu1 }
 0x161   :  { %2932 = vmatpush1.bf16.xpose.msra.mxu0 %v3522_v27  ;;  %3286 = vmatpush3.bf16.xpose.msra.mxu1 %v1392_v30 }
 0x162   :  { %3291 = vmatprep.subr.mxu0 %v3603_v8 }
 0x168   :  { %v1991_v34 = vpop.f32.mrf.mxu0  ;;  %v2031_v35 = vpop.f32.mrf.mxu1  ;;  %2950 = vmatmul.mubr.bf16.vlgmr.msra.gmra.mxu0 %v588_v33  ;;  %3288 = vmatmul.mubr.msk.bf16.vlgmr.msra.gmra.mxu1 %vm1387_vm0, %v590_v32 }
 0x169   :  { %v1992_v36 = vadd.f32 %v1991_v34, %v1952_v23  ;;  %3297 = vmatprep.mubr.msk.f32.mxu0 %vm3604_vm1, %v3603_v8  ;;  %3292 = vmatpush3.msra.mxu0 %v3000_v11 }
 0x16a   :  { %v1993_v37 = vpop.f32.mrf.mxu0  ;;  %v2033_v38 = vpop.f32.mrf.mxu1  ;;  %3293 = vmatprep.subr.mxu0 %v3603_v8 }
 0x16b   :  { %v2032_v39 = vadd.f32 %v2031_v35, %v1992_v36  ;;  %3294 = vmatpush3.msra.mxu0 %v2999_v18 }
 0x16c   :  { %v1994_v40 = vpop.f32.mrf.mxu0  ;;  %v2034_v7 = vpop.f32.mrf.mxu1  ;;  %3295 = vmatprep.subr.mxu0 %v3603_v8 }
 0x16d   :  { %3296 = vmatpush3.msra.mxu0 %v2998_v21 }
 0x16e   :  { %v1995_v41 = vpop.f32.mrf.mxu0  ;;  %v2035_v42 = vpop.f32.mrf.mxu1 }
 0x178   :  { %v2071_v43 = vpop.f32.mrf.mxu0  ;;  %v2111_v44 = vpop.f32.mrf.mxu1 }
 0x179   :  { %v2072_v45 = vadd.f32 %v2071_v43, %v2032_v39 }
 0x17a   :  { %v2073_v46 = vpop.f32.mrf.mxu0  ;;  %v2113_v47 = vpop.f32.mrf.mxu1 }
 0x17b   :  { %v2112_v48 = vadd.f32 %v2111_v44, %v2072_v45 }
 0x17c   :  { %v2074_v49 = vpop.f32.mrf.mxu0  ;;  %v2114_v50 = vpop.f32.mrf.mxu1 }
 0x17e   :  { %v2075_v51 = vpop.f32.mrf.mxu0  ;;  %v2115_v52 = vpop.f32.mrf.mxu1 }
 0x188   :  { %v2151_v53 = vpop.f32.mrf.mxu0  ;;  %v2191_v54 = vpop.f32.mrf.mxu1 }
 0x189   :  { %v2152_v55 = vadd.f32 %v2151_v53, %v2112_v48 }
 0x18a   :  { %v2153_v56 = vpop.f32.mrf.mxu0  ;;  %v2193_v57 = vpop.f32.mrf.mxu1 }
 0x18b   :  { %v2192_v58 = vadd.f32 %v2191_v54, %v2152_v55 }
 0x18c   :  { %v2154_v59 = vpop.f32.mrf.mxu0  ;;  %v2194_v60 = vpop.f32.mrf.mxu1 }
 0x18e   :  { %v2155_v61 = vpop.f32.mrf.mxu0  ;;  %v2195_v62 = vpop.f32.mrf.mxu1 }
 0x198   :  { %v2231_v63 = vpop.f32.mrf.mxu0  ;;  %v2271_v0 = vpop.f32.mrf.mxu1 }
 0x199   :  { %v2232_v1 = vadd.f32 %v2231_v63, %v2192_v58 }
 0x19a   :  { %v2233_v2 = vpop.f32.mrf.mxu0  ;;  %v2273_v3 = vpop.f32.mrf.mxu1 }
 0x19b   :  { %v2272_v4 = vadd.f32 %v2271_v0, %v2232_v1 }
 0x19c   :  { %v2234_v5 = vpop.f32.mrf.mxu0  ;;  %v2274_v6 = vpop.f32.mrf.mxu1 }
 0x19e   :  { %v2235_v9 = vpop.f32.mrf.mxu0  ;;  %v2275_v10 = vpop.f32.mrf.mxu1 }
 0x1a8   :  { %v2311_v12 = vpop.f32.mrf.mxu0  ;;  %v2351_v13 = vpop.f32.mrf.mxu1 }
 0x1a9   :  { %v2312_v14 = vadd.f32 %v2311_v12, %v2272_v4 }
 0x1aa   :  { %v2313_v15 = vpop.f32.mrf.mxu0  ;;  %v2353_v16 = vpop.f32.mrf.mxu1 }
 0x1ab   :  { %v2352_v17 = vadd.f32 %v2351_v13, %v2312_v14 }
 0x1ac   :  { %v2314_v19 = vpop.f32.mrf.mxu0  ;;  %v2354_v20 = vpop.f32.mrf.mxu1 }
 0x1ae   :  { %v2315_v22 = vpop.f32.mrf.mxu0  ;;  %v2355_v23 = vpop.f32.mrf.mxu1 }
 0x1b8   :  { %v2391_v24 = vpop.f32.mrf.mxu0  ;;  %v2431_v25 = vpop.f32.mrf.mxu1 }
 0x1b9   :  { %v2392_v26 = vadd.f32 %v2391_v24, %v2352_v17 }
 0x1ba   :  { %v2393_v27 = vpop.f32.mrf.mxu0  ;;  %v2433_v28 = vpop.f32.mrf.mxu1 }
 0x1bb   :  { %v2432_v29 = vadd.f32 %v2431_v25, %v2392_v26 }
 0x1bc   :  { %v2394_v30 = vpop.f32.mrf.mxu0  ;;  %v2434_v31 = vpop.f32.mrf.mxu1 }
 0x1be   :  { %v2395_v32 = vpop.f32.mrf.mxu0  ;;  %v2435_v33 = vpop.f32.mrf.mxu1 }
 0x1c8   :  { %v2471_v34 = vpop.f32.mrf.mxu0  ;;  %v2511_v35 = vpop.f32.mrf.mxu1 }
 0x1c9   :  { %v2472_v36 = vadd.f32 %v2471_v34, %v2432_v29 }
 0x1ca   :  { %v2473_v37 = vpop.f32.mrf.mxu0  ;;  %v2513_v38 = vpop.f32.mrf.mxu1 }
 0x1cb   :  { %v2512_v8 = vadd.f32 %v2511_v35, %v2472_v36 }
 0x1cc   :  { %v2474_v39 = vpop.f32.mrf.mxu0  ;;  %v2514_v40 = vpop.f32.mrf.mxu1 }
 0x1cd   :  { %v3271_v40 = vld [vmem:[#allocation6 + $0x20] ss:$0 sm:$0xff] }
 0x1ce   :  { %v2475_v7 = vpop.f32.mrf.mxu0  ;;  %v2515_v41 = vpop.f32.mrf.mxu1 }
 0x1d8   :  { %v2551_v42 = vpop.f32.mrf.mxu0  ;;  %v2591_v43 = vpop.f32.mrf.mxu1 }
 0x1d9   :  { %v2552_v6 = vadd.f32 %v2551_v42, %v2512_v8 }
 0x1da   :  { %v2553_v44 = vpop.f32.mrf.mxu0  ;;  %v2593_v45 = vpop.f32.mrf.mxu1 }
 0x1db   :  { %v2592_v13 = vadd.f32 %v2591_v43, %v2552_v6  ;;  %v3273_v43 = vld [vmem:[#allocation6 + $0x28] ss:$0 sm:$0xff] }
 0x1dc   :  { %v2554_v46 = vpop.f32.mrf.mxu0  ;;  %v2594_v47 = vpop.f32.mrf.mxu1 }
 0x1dd   :  { %v3274_v47 = vld [vmem:[#allocation6 + $0x30] ss:$0 sm:$0xff] }
 0x1de   :  { %v2555_v48 = vpop.f32.mrf.mxu0  ;;  %v2595_v49 = vpop.f32.mrf.mxu1 }
 0x1e8   :  { %v2631_v50 = vpop.f32.mrf.mxu0  ;;  %v2671_v51 = vpop.f32.mrf.mxu1 }
 0x1e9   :  { %v2632_v14 = vadd.f32 %v2631_v50, %v2592_v13 }
 0x1ea   :  { %v2633_v52 = vpop.f32.mrf.mxu0  ;;  %v2673_v53 = vpop.f32.mrf.mxu1 }
 0x1eb   :  { %v2672_v15 = vadd.f32 %v2671_v51, %v2632_v14 }
 0x1ec   :  { %v2634_v54 = vpop.f32.mrf.mxu0  ;;  %v2674_v55 = vpop.f32.mrf.mxu1 }
 0x1ee   :  { %v2635_v56 = vpop.f32.mrf.mxu0  ;;  %v2675_v57 = vpop.f32.mrf.mxu1 }
 0x1f8   :  { %v2711_v58 = vpop.f32.mrf.mxu0  ;;  %v2751_v59 = vpop.f32.mrf.mxu1 }
 0x1f9   :  { %v2712_v16 = vadd.f32 %v2711_v58, %v2672_v15 }
 0x1fa   :  { %v2713_v60 = vpop.f32.mrf.mxu0  ;;  %v2753_v61 = vpop.f32.mrf.mxu1 }
 0x1fb   :  { %v2752_v21 = vadd.f32 %v2751_v59, %v2712_v16 }
 0x1fc   :  { %v2714_v62 = vpop.f32.mrf.mxu0  ;;  %v2754_v63 = vpop.f32.mrf.mxu1 }
 0x1fe   :  { %v2715_v0 = vpop.f32.mrf.mxu0  ;;  %v2755_v1 = vpop.f32.mrf.mxu1 }
 0x208   :  { %v2791_v2 = vpop.f32.mrf.mxu0  ;;  %v2831_v3 = vpop.f32.mrf.mxu1 }
 0x209   :  { %v2792_v24 = vadd.f32 %v2791_v2, %v2752_v21 }
 0x20a   :  { %v2793_v4 = vpop.f32.mrf.mxu0  ;;  %v2833_v5 = vpop.f32.mrf.mxu1 }
 0x20b   :  { %v2832_v27 = vadd.f32 %v2831_v3, %v2792_v24 }
 0x20c   :  { %v2794_v9 = vpop.f32.mrf.mxu0  ;;  %v2834_v10 = vpop.f32.mrf.mxu1 }
 0x20e   :  { %v2795_v11 = vpop.f32.mrf.mxu0  ;;  %v2835_v12 = vpop.f32.mrf.mxu1 }
 0x218   :  { %v2871_v17 = vpop.f32.mrf.mxu0  ;;  %v2911_v18 = vpop.f32.mrf.mxu1 }
 0x219   :  { %v2872_v28 = vadd.f32 %v2871_v17, %v2832_v27 }
 0x21a   :  { %v2873_v19 = vpop.f32.mrf.mxu0  ;;  %v2913_v20 = vpop.f32.mrf.mxu1 }
 0x21b   :  { %v2912_v29 = vadd.f32 %v2911_v18, %v2872_v28 }
 0x21c   :  { %v2874_v22 = vpop.f32.mrf.mxu0  ;;  %v2914_v23 = vpop.f32.mrf.mxu1 }
 0x21e   :  { %v2875_v25 = vpop.f32.mrf.mxu0  ;;  %v2915_v26 = vpop.f32.mrf.mxu1 }
 0x228   :  { %v2951_v30 = vpop.f32.mrf.mxu0  ;;  %v2991_v31 = vpop.f32.mrf.mxu1 }
 0x229   :  { %v2952_v32 = vadd.f32 %v2951_v30, %v2912_v29 }
 0x22a   :  { %v2953_v33 = vpop.f32.mrf.mxu0  ;;  %v3289_v34 = vpop.f32.mrf.mxu1 }
 0x22b   :  { %v2992_v35 = vadd.f32 %v2991_v31, %v2952_v32 }
 0x22c   :  { %v2954_v36 = vpop.f32.mrf.mxu0  ;;  %v2994_v37 = vpop.f32.mrf.mxu1 }
 0x22d   :  { %v2997_v38 = vmax.f32 %v2992_v35, 0.0 }
 0x22e   :  { %v2955_v8 = vpop.f32.mrf.mxu0  ;;  %v3290_v39 = vpop.f32.mrf.mxu1 }
 0x22f   :  { %3298 = vmatmul.mubr.msk.f32.vlgmr.msra.gmra.mxu0 %vm3006_vm2, %v2997_v38 }
 0x2ef   :  { %v3076_v7 = vpop.f32.mrf.mxu0 }
 0x2f0   :  { %v3077_v41 = vadd.f32 %v3271_v40, %v3076_v7 }
 0x2f1   :  { %v3299_v42 = vpop.f32.mrf.mxu0 }
 0x2f2   :  { %v3080_v44 = vmax.f32 %v3077_v41, 0.0 }
 0x2f4   :  { %v3087_v45 = vmul.f32 %v3273_v43, %v3080_v44 }
 0x2f6   :  { %v3089_v46 = vsel %vm3088_vm3, %v3087_v45, 0.0 }
 0x2f7   :  { %3090 = vadd.xlane.f32.xlu0 %v3089_v46 }
 0x380   :  { %v3091_v48 = vpop.xlane.xlu0 %3090 }
 0x381   :  { %v3096_v49 = vadd.f32 %v3274_v47, %v3091_v48 }
 0x383   :  { %v3275_v50 = vmul.f32 -1.442695, %v3096_v49 }
 0x385   :  { %3527 = vpow2.f32 %v3275_v50 }
 0x392   :  { %v3528_v51 = vpop.eup %3527 }
 0x393   :  { %v3100_v52 = vadd.f32 1.0, %v3528_v51 }
 0x395   :  { %3529 = vrcp.f32 %v3100_v52 }
 0x3a2   :  { %v3530_v53 = vpop.eup %3529 }
 0x3a3   :  { %3104 = vst.msk [vmem:[%s3694_s3] sm:$0x3] %vm3103_vm4, %v3530_v53 }
 0x3a4   :  { %3109 = vsyncpa [#allocation3], 1 }
 0x3a5   :  { %3110 = vsyncpa [#allocation5], 1 }

</bundles_post_ra>
